<compile_context>
chip_gen: v6e
topology: v6e:2x2x1
jax: 0.10.0
libtpu: 0.0.40
codegen_flags: <defaults>
</compile_context>

<pallas_src>
import functools

import jax
import jax.numpy as jnp
from jax import lax
from jax.experimental import pallas as pl
from jax.experimental.pallas import tpu as pltpu


def _conv_bias_relu_kernel(x_ref, w_ref, b_ref, o_ref, *,
                           H, W, KH, KW, P, NB, im2col_bf16):
    # x_ref: (NB, Cin, H*W)        -- NB batch images, NCHW with spatial on lanes
    # w_ref: (Cout, KH*KW*Cin) bf16 -- rows ordered (kh, kw) tap-major, cin fastest
    # b_ref: (Cout, 1) f32
    # o_ref: (NB, Cout, H*W)       -- identical memory layout to NCHW (free reshape outside)
    HW = H * W
    Cin = x_ref.shape[1]
    im2col_dtype = jnp.bfloat16 if im2col_bf16 else jnp.float32

    # Column-validity masks, shared by every tap / image / input channel.
    # The h-direction check is intentionally dropped: an h-invalid source row
    # either maps outside [0, HW) (zero-filled by the shift's concat) or wraps
    # into an invalid column (zeroed by the column mask below). Taps with
    # kw == P never leave the valid column range and need no mask at all.
    w_out = lax.broadcasted_iota(jnp.int32, (1, HW), 1) % W
    col_mask = {}
    for kw in range(KW):
        dw = kw - P
        if dw != 0:
            col_mask[kw] = (w_out + dw >= 0) & (w_out + dw < W)   # (1, HW) bool

    zeros = jnp.zeros((Cin, HW), im2col_dtype)
    zero = jnp.zeros((), im2col_dtype)

    def im2col(xb):
        # xb: (Cin, HW) in im2col_dtype. Each conv tap is a static lane shift
        # (slice + concat with zeros) plus at most one broadcast column-mask select.
        taps = []
        for kh in range(KH):
            for kw in range(KW):
                d = (kh - P) * W + (kw - P)          # static per-tap lane shift
                if d > 0:
                    shifted = jnp.concatenate([xb[:, d:], zeros[:, :d]], axis=1)
                elif d < 0:
                    shifted = jnp.concatenate([zeros[:, :(-d)], xb[:, :HW + d]], axis=1)
                else:
                    shifted = xb
                if kw != P:
                    shifted = jnp.where(col_mask[kw], shifted, zero)
                taps.append(shifted)
        return jnp.concatenate(taps, axis=0)          # (KH*KW*Cin, HW)

    x = x_ref[...]                                    # (NB, Cin, HW)
    patches = jnp.concatenate(
        [im2col(x[b].astype(im2col_dtype)) for b in range(NB)],
        axis=1,                                       # lane-aligned: HW % 128 == 0
    ).astype(jnp.bfloat16)                            # (K, NB*HW)

    # Single fused MXU contraction over all NB images, f32 accumulation.
    acc = jnp.dot(w_ref[...], patches,
                  preferred_element_type=jnp.float32)  # (Cout, NB*HW)

    # Bias + ReLU in f32.
    y = jnp.maximum(acc + b_ref[...], 0.0)

    # Split the lane axis back per image; slices are 256-lane aligned slabs.
    for b in range(NB):
        o_ref[b] = y[:, b * HW:(b + 1) * HW].astype(o_ref.dtype)


def conv_module_forward(x_nchw, weight, bias, *, stride=1, padding=1,
                        dilation=1, groups=1):
    """Forward of ConvModule(in_c, out_c, k, padding): ReLU(conv2d(x, W) + b).

    x_nchw: (N, Cin, H, W) float32
    weight: (Cout, Cin, KH, KW) float32 (PyTorch OIHW layout)
    bias:   (Cout,) float32
    Returns: (N, Cout, H, W) float32
    """
    N, Cin, H, W = x_nchw.shape
    Cout, Cin_w, KH, KW = weight.shape
    # TODO(synk): stride>1, dilation>1, groups>1, norm layers, non-ReLU activations,
    # spectral norm and non-'zeros' padding modes are not implemented (module defaults only).
    assert stride == 1 and dilation == 1 and groups == 1 and Cin_w == Cin
    Ho = H + 2 * padding - KH + 1
    Wo = W + 2 * padding - KW + 1
    # The lane-shift im2col fast path needs same-size output (e.g. k=3, padding=1).
    assert Ho == H and Wo == W, "fast path requires same-padding with stride 1"

    HW = H * W
    K = KH * KW * Cin

    # Batch tile per grid step: largest divisor of N that is <= 8. Amortizes the
    # per-step fixed cost; at tiny N this is the dominant speedup.
    NB = max(d for d in range(1, min(N, 8) + 1) if N % d == 0)

    # bf16 im2col only where the VPU has bf16 support (v6e / v7x); keep f32 on v5e.
    kind = jax.devices()[0].device_kind.lower()
    im2col_bf16 = any(tag in kind for tag in ("v6", "v7"))

    # Free / tiny host-side prep: no transpose or pad of x in HBM.
    x_flat = x_nchw.reshape(N, Cin, HW)                            # free reshape
    w_mat = jnp.transpose(weight, (0, 2, 3, 1)).reshape(Cout, K)   # tap-major rows
    w_mat = w_mat.astype(jnp.bfloat16)
    b2 = bias.reshape(Cout, 1).astype(jnp.float32)

    kernel = functools.partial(_conv_bias_relu_kernel,
                               H=H, W=W, KH=KH, KW=KW, P=padding,
                               NB=NB, im2col_bf16=im2col_bf16)

    out_flat = pl.pallas_call(
        kernel,
        out_shape=jax.ShapeDtypeStruct((N, Cout, HW), x_nchw.dtype),
        grid=(N // NB,),
        in_specs=[
            pl.BlockSpec((NB, Cin, HW), lambda n: (n, 0, 0)),
            pl.BlockSpec((Cout, K), lambda n: (0, 0)),
            pl.BlockSpec((Cout, 1), lambda n: (0, 0)),
        ],
        out_specs=pl.BlockSpec((NB, Cout, HW), lambda n: (n, 0, 0)),
        compiler_params=pltpu.CompilerParams(
            dimension_semantics=("parallel",)),
    )(x_flat, w_mat, b2)

    # (N, Cout, H*W) row-major == NCHW row-major: free reshape, no transpose.
    return out_flat.reshape(N, Cout, Ho, Wo)


if __name__ == "__main__":
    key = jax.random.PRNGKey(0)
    k_x, k_w = jax.random.split(key)

    # ConvModule(in_channels=4, out_channels=8, kernel_size=3, padding=1), defaults:
    # conv2d + bias ('auto' -> True since norm_cfg=None) + ReLU.
    N, Cin, H, W = 2, 4, 16, 16
    Cout, KH, KW = 8, 3, 3

    x = jax.random.normal(k_x, (N, Cin, H, W), dtype=jnp.float32)

    # Deterministic kaiming-normal init (nonlinearity='relu'): std = sqrt(2 / fan_in), bias = 0.
    fan_in = Cin * KH * KW
    weight = jax.random.normal(k_w, (Cout, Cin, KH, KW), dtype=jnp.float32) * jnp.sqrt(2.0 / fan_in)
    bias = jnp.zeros((Cout,), dtype=jnp.float32)

    out = conv_module_forward(x, weight, bias, padding=1)
    out = jax.block_until_ready(out)
    assert out.shape == (N, Cout, H, W)

    # Reference with the same precision story (bf16 operands, f32 accumulation).
    ref = jax.lax.conv_general_dilated(
        x.astype(jnp.bfloat16), weight.astype(jnp.bfloat16),
        window_strides=(1, 1), padding=((1, 1), (1, 1)),
        dimension_numbers=("NCHW", "OIHW", "NCHW"),
        preferred_element_type=jnp.float32)
    ref = jnp.maximum(ref + bias[None, :, None, None], 0.0)
    assert jnp.allclose(out, ref, atol=1e-3, rtol=1e-3), float(jnp.max(jnp.abs(out - ref)))

    print("KERNEL_OK")
</pallas_src>

<mosaic_0001>
module attributes {stable_mosaic.version = 11 : i64} {
  func.func @_conv_bias_relu_kernel(%arg0: i32, %arg1: memref<2x4x256xf32, #tpu.memory_space<vmem>>, %arg2: memref<8x36xbf16, #tpu.memory_space<vmem>>, %arg3: memref<8x1xf32, #tpu.memory_space<vmem>>, %arg4: memref<2x8x256xf32, #tpu.memory_space<vmem>>) attributes {dimension_semantics = [#tpu.dimension_semantics<parallel>], iteration_bounds = array<i64: 1>, scalar_prefetch = 0 : i64, scratch_operands = 0 : i64, tpu.core_type = #tpu.core_type<tc>, window_params = [{transform_indices = @transform_0, window_bounds = array<i64: 2, 4, 256>}, {pipeline_mode = #tpu.pipeline_mode<synchronous>, transform_indices = @transform_1, window_bounds = array<i64: 8, 36>}, {pipeline_mode = #tpu.pipeline_mode<synchronous>, transform_indices = @transform_2, window_bounds = array<i64: 8, 1>}, {transform_indices = @transform_3, window_bounds = array<i64: 2, 8, 256>}]} {
    %0 = tpu.iota {dimensions = array<i32: 1>} : vector<1x256xi32>
    %c16_i32 = arith.constant 16 : i32
    %c0_i32 = arith.constant 0 : i32
    %1 = arith.cmpi eq, %c16_i32, %c0_i32 : i32
    %c1_i32 = arith.constant 1 : i32
    %2 = arith.select %1, %c1_i32, %c16_i32 : i32
    %3 = vector.broadcast %2 : i32 to vector<1x256xi32>
    %4 = arith.remsi %0, %3 : vector<1x256xi32>
    %c0_i32_0 = arith.constant 0 : i32
    %5 = vector.broadcast %c0_i32_0 : i32 to vector<1x256xi32>
    %6 = arith.cmpi ne, %4, %5 : vector<1x256xi32>
    %c0_i32_1 = arith.constant 0 : i32
    %7 = vector.broadcast %c0_i32_1 : i32 to vector<1x256xi32>
    %8 = arith.cmpi slt, %4, %7 : vector<1x256xi32>
    %c0_i32_2 = arith.constant 0 : i32
    %9 = arith.cmpi slt, %2, %c0_i32_2 : i32
    %10 = vector.broadcast %9 : i1 to vector<1x256xi1>
    %11 = vector.broadcast %10 : vector<1x256xi1> to vector<1x256xi1>
    %12 = arith.xori %8, %11 : vector<1x256xi1>
    %13 = arith.andi %12, %6 : vector<1x256xi1>
    %14 = vector.broadcast %2 : i32 to vector<1x256xi32>
    %15 = arith.addi %4, %14 : vector<1x256xi32>
    %16 = arith.select %13, %15, %4 : vector<1x256xi1>, vector<1x256xi32>
    %c-1_i32 = arith.constant -1 : i32
    %17 = vector.broadcast %c-1_i32 : i32 to vector<1x256xi32>
    %18 = arith.addi %16, %17 : vector<1x256xi32>
    %c0_i32_3 = arith.constant 0 : i32
    %19 = vector.broadcast %c0_i32_3 : i32 to vector<1x256xi32>
    %20 = arith.cmpi sge, %18, %19 : vector<1x256xi32>
    %c-1_i32_4 = arith.constant -1 : i32
    %21 = vector.broadcast %c-1_i32_4 : i32 to vector<1x256xi32>
    %22 = arith.addi %16, %21 : vector<1x256xi32>
    %c16_i32_5 = arith.constant 16 : i32
    %23 = vector.broadcast %c16_i32_5 : i32 to vector<1x256xi32>
    %24 = arith.cmpi slt, %22, %23 : vector<1x256xi32>
    %25 = arith.andi %20, %24 : vector<1x256xi1>
    %c1_i32_6 = arith.constant 1 : i32
    %26 = vector.broadcast %c1_i32_6 : i32 to vector<1x256xi32>
    %27 = arith.addi %16, %26 : vector<1x256xi32>
    %c0_i32_7 = arith.constant 0 : i32
    %28 = vector.broadcast %c0_i32_7 : i32 to vector<1x256xi32>
    %29 = arith.cmpi sge, %27, %28 : vector<1x256xi32>
    %c1_i32_8 = arith.constant 1 : i32
    %30 = vector.broadcast %c1_i32_8 : i32 to vector<1x256xi32>
    %31 = arith.addi %16, %30 : vector<1x256xi32>
    %c16_i32_9 = arith.constant 16 : i32
    %32 = vector.broadcast %c16_i32_9 : i32 to vector<1x256xi32>
    %33 = arith.cmpi slt, %31, %32 : vector<1x256xi32>
    %34 = arith.andi %29, %33 : vector<1x256xi1>
    %cst = arith.constant 0.000000e+00 : f32
    %35 = vector.broadcast %cst : f32 to vector<4x256xf32>
    %c0 = arith.constant 0 : index
    %c0_10 = arith.constant 0 : index
    %c0_11 = arith.constant 0 : index
    %36 = vector.load %arg1[%c0, %c0_10, %c0_11] : memref<2x4x256xf32, #tpu.memory_space<vmem>>, vector<2x4x256xf32>
    %37 = vector.extract_strided_slice %36 {offsets = [0, 0, 0], sizes = [1, 4, 256], strides = [1, 1, 1]} : vector<2x4x256xf32> to vector<1x4x256xf32>
    %38 = vector.shape_cast %37 : vector<1x4x256xf32> to vector<4x256xf32>
    %39 = vector.extract_strided_slice %35 {offsets = [0, 0], sizes = [4, 17], strides = [1, 1]} : vector<4x256xf32> to vector<4x17xf32>
    %40 = vector.extract_strided_slice %38 {offsets = [0, 0], sizes = [4, 239], strides = [1, 1]} : vector<4x256xf32> to vector<4x239xf32>
    %41 = tpu.concatenate %39, %40 in 1 : vector<4x17xf32>, vector<4x239xf32> -> vector<4x256xf32>
    %cst_12 = arith.constant 0.000000e+00 : f32
    %42 = vector.shape_cast %25 : vector<1x256xi1> to vector<1x256xi1>
    %43 = vector.broadcast %42 : vector<1x256xi1> to vector<4x256xi1>
    %44 = vector.broadcast %cst_12 : f32 to vector<4x256xf32>
    %45 = arith.select %43, %41, %44 : vector<4x256xi1>, vector<4x256xf32>
    %46 = vector.extract_strided_slice %35 {offsets = [0, 0], sizes = [4, 16], strides = [1, 1]} : vector<4x256xf32> to vector<4x16xf32>
    %47 = vector.extract_strided_slice %38 {offsets = [0, 0], sizes = [4, 240], strides = [1, 1]} : vector<4x256xf32> to vector<4x240xf32>
    %48 = tpu.concatenate %46, %47 in 1 : vector<4x16xf32>, vector<4x240xf32> -> vector<4x256xf32>
    %49 = vector.extract_strided_slice %35 {offsets = [0, 0], sizes = [4, 15], strides = [1, 1]} : vector<4x256xf32> to vector<4x15xf32>
    %50 = vector.extract_strided_slice %38 {offsets = [0, 0], sizes = [4, 241], strides = [1, 1]} : vector<4x256xf32> to vector<4x241xf32>
    %51 = tpu.concatenate %49, %50 in 1 : vector<4x15xf32>, vector<4x241xf32> -> vector<4x256xf32>
    %cst_13 = arith.constant 0.000000e+00 : f32
    %52 = vector.shape_cast %34 : vector<1x256xi1> to vector<1x256xi1>
    %53 = vector.broadcast %52 : vector<1x256xi1> to vector<4x256xi1>
    %54 = vector.broadcast %cst_13 : f32 to vector<4x256xf32>
    %55 = arith.select %53, %51, %54 : vector<4x256xi1>, vector<4x256xf32>
    %56 = vector.extract_strided_slice %35 {offsets = [0, 0], sizes = [4, 1], strides = [1, 1]} : vector<4x256xf32> to vector<4x1xf32>
    %57 = vector.extract_strided_slice %38 {offsets = [0, 0], sizes = [4, 255], strides = [1, 1]} : vector<4x256xf32> to vector<4x255xf32>
    %58 = tpu.concatenate %56, %57 in 1 : vector<4x1xf32>, vector<4x255xf32> -> vector<4x256xf32>
    %cst_14 = arith.constant 0.000000e+00 : f32
    %59 = vector.shape_cast %25 : vector<1x256xi1> to vector<1x256xi1>
    %60 = vector.broadcast %59 : vector<1x256xi1> to vector<4x256xi1>
    %61 = vector.broadcast %cst_14 : f32 to vector<4x256xf32>
    %62 = arith.select %60, %58, %61 : vector<4x256xi1>, vector<4x256xf32>
    %63 = vector.extract_strided_slice %38 {offsets = [0, 1], sizes = [4, 255], strides = [1, 1]} : vector<4x256xf32> to vector<4x255xf32>
    %64 = vector.extract_strided_slice %35 {offsets = [0, 0], sizes = [4, 1], strides = [1, 1]} : vector<4x256xf32> to vector<4x1xf32>
    %65 = tpu.concatenate %63, %64 in 1 : vector<4x255xf32>, vector<4x1xf32> -> vector<4x256xf32>
    %cst_15 = arith.constant 0.000000e+00 : f32
    %66 = vector.shape_cast %34 : vector<1x256xi1> to vector<1x256xi1>
    %67 = vector.broadcast %66 : vector<1x256xi1> to vector<4x256xi1>
    %68 = vector.broadcast %cst_15 : f32 to vector<4x256xf32>
    %69 = arith.select %67, %65, %68 : vector<4x256xi1>, vector<4x256xf32>
    %70 = vector.extract_strided_slice %38 {offsets = [0, 15], sizes = [4, 241], strides = [1, 1]} : vector<4x256xf32> to vector<4x241xf32>
    %71 = vector.extract_strided_slice %35 {offsets = [0, 0], sizes = [4, 15], strides = [1, 1]} : vector<4x256xf32> to vector<4x15xf32>
    %72 = tpu.concatenate %70, %71 in 1 : vector<4x241xf32>, vector<4x15xf32> -> vector<4x256xf32>
    %cst_16 = arith.constant 0.000000e+00 : f32
    %73 = vector.shape_cast %25 : vector<1x256xi1> to vector<1x256xi1>
    %74 = vector.broadcast %73 : vector<1x256xi1> to vector<4x256xi1>
    %75 = vector.broadcast %cst_16 : f32 to vector<4x256xf32>
    %76 = arith.select %74, %72, %75 : vector<4x256xi1>, vector<4x256xf32>
    %77 = vector.extract_strided_slice %38 {offsets = [0, 16], sizes = [4, 240], strides = [1, 1]} : vector<4x256xf32> to vector<4x240xf32>
    %78 = vector.extract_strided_slice %35 {offsets = [0, 0], sizes = [4, 16], strides = [1, 1]} : vector<4x256xf32> to vector<4x16xf32>
    %79 = tpu.concatenate %77, %78 in 1 : vector<4x240xf32>, vector<4x16xf32> -> vector<4x256xf32>
    %80 = vector.extract_strided_slice %38 {offsets = [0, 17], sizes = [4, 239], strides = [1, 1]} : vector<4x256xf32> to vector<4x239xf32>
    %81 = vector.extract_strided_slice %35 {offsets = [0, 0], sizes = [4, 17], strides = [1, 1]} : vector<4x256xf32> to vector<4x17xf32>
    %82 = tpu.concatenate %80, %81 in 1 : vector<4x239xf32>, vector<4x17xf32> -> vector<4x256xf32>
    %cst_17 = arith.constant 0.000000e+00 : f32
    %83 = vector.shape_cast %34 : vector<1x256xi1> to vector<1x256xi1>
    %84 = vector.broadcast %83 : vector<1x256xi1> to vector<4x256xi1>
    %85 = vector.broadcast %cst_17 : f32 to vector<4x256xf32>
    %86 = arith.select %84, %82, %85 : vector<4x256xi1>, vector<4x256xf32>
    %87 = tpu.concatenate %45, %48, %55, %62, %38, %69, %76, %79, %86 in 0 : vector<4x256xf32>, vector<4x256xf32>, vector<4x256xf32>, vector<4x256xf32>, vector<4x256xf32>, vector<4x256xf32>, vector<4x256xf32>, vector<4x256xf32>, vector<4x256xf32> -> vector<36x256xf32>
    %88 = vector.extract_strided_slice %36 {offsets = [1, 0, 0], sizes = [1, 4, 256], strides = [1, 1, 1]} : vector<2x4x256xf32> to vector<1x4x256xf32>
    %89 = vector.shape_cast %88 : vector<1x4x256xf32> to vector<4x256xf32>
    %90 = vector.extract_strided_slice %35 {offsets = [0, 0], sizes = [4, 17], strides = [1, 1]} : vector<4x256xf32> to vector<4x17xf32>
    %91 = vector.extract_strided_slice %89 {offsets = [0, 0], sizes = [4, 239], strides = [1, 1]} : vector<4x256xf32> to vector<4x239xf32>
    %92 = tpu.concatenate %90, %91 in 1 : vector<4x17xf32>, vector<4x239xf32> -> vector<4x256xf32>
    %cst_18 = arith.constant 0.000000e+00 : f32
    %93 = vector.shape_cast %25 : vector<1x256xi1> to vector<1x256xi1>
    %94 = vector.broadcast %93 : vector<1x256xi1> to vector<4x256xi1>
    %95 = vector.broadcast %cst_18 : f32 to vector<4x256xf32>
    %96 = arith.select %94, %92, %95 : vector<4x256xi1>, vector<4x256xf32>
    %97 = vector.extract_strided_slice %35 {offsets = [0, 0], sizes = [4, 16], strides = [1, 1]} : vector<4x256xf32> to vector<4x16xf32>
    %98 = vector.extract_strided_slice %89 {offsets = [0, 0], sizes = [4, 240], strides = [1, 1]} : vector<4x256xf32> to vector<4x240xf32>
    %99 = tpu.concatenate %97, %98 in 1 : vector<4x16xf32>, vector<4x240xf32> -> vector<4x256xf32>
    %100 = vector.extract_strided_slice %35 {offsets = [0, 0], sizes = [4, 15], strides = [1, 1]} : vector<4x256xf32> to vector<4x15xf32>
    %101 = vector.extract_strided_slice %89 {offsets = [0, 0], sizes = [4, 241], strides = [1, 1]} : vector<4x256xf32> to vector<4x241xf32>
    %102 = tpu.concatenate %100, %101 in 1 : vector<4x15xf32>, vector<4x241xf32> -> vector<4x256xf32>
    %cst_19 = arith.constant 0.000000e+00 : f32
    %103 = vector.shape_cast %34 : vector<1x256xi1> to vector<1x256xi1>
    %104 = vector.broadcast %103 : vector<1x256xi1> to vector<4x256xi1>
    %105 = vector.broadcast %cst_19 : f32 to vector<4x256xf32>
    %106 = arith.select %104, %102, %105 : vector<4x256xi1>, vector<4x256xf32>
    %107 = vector.extract_strided_slice %35 {offsets = [0, 0], sizes = [4, 1], strides = [1, 1]} : vector<4x256xf32> to vector<4x1xf32>
    %108 = vector.extract_strided_slice %89 {offsets = [0, 0], sizes = [4, 255], strides = [1, 1]} : vector<4x256xf32> to vector<4x255xf32>
    %109 = tpu.concatenate %107, %108 in 1 : vector<4x1xf32>, vector<4x255xf32> -> vector<4x256xf32>
    %cst_20 = arith.constant 0.000000e+00 : f32
    %110 = vector.shape_cast %25 : vector<1x256xi1> to vector<1x256xi1>
    %111 = vector.broadcast %110 : vector<1x256xi1> to vector<4x256xi1>
    %112 = vector.broadcast %cst_20 : f32 to vector<4x256xf32>
    %113 = arith.select %111, %109, %112 : vector<4x256xi1>, vector<4x256xf32>
    %114 = vector.extract_strided_slice %89 {offsets = [0, 1], sizes = [4, 255], strides = [1, 1]} : vector<4x256xf32> to vector<4x255xf32>
    %115 = vector.extract_strided_slice %35 {offsets = [0, 0], sizes = [4, 1], strides = [1, 1]} : vector<4x256xf32> to vector<4x1xf32>
    %116 = tpu.concatenate %114, %115 in 1 : vector<4x255xf32>, vector<4x1xf32> -> vector<4x256xf32>
    %cst_21 = arith.constant 0.000000e+00 : f32
    %117 = vector.shape_cast %34 : vector<1x256xi1> to vector<1x256xi1>
    %118 = vector.broadcast %117 : vector<1x256xi1> to vector<4x256xi1>
    %119 = vector.broadcast %cst_21 : f32 to vector<4x256xf32>
    %120 = arith.select %118, %116, %119 : vector<4x256xi1>, vector<4x256xf32>
    %121 = vector.extract_strided_slice %89 {offsets = [0, 15], sizes = [4, 241], strides = [1, 1]} : vector<4x256xf32> to vector<4x241xf32>
    %122 = vector.extract_strided_slice %35 {offsets = [0, 0], sizes = [4, 15], strides = [1, 1]} : vector<4x256xf32> to vector<4x15xf32>
    %123 = tpu.concatenate %121, %122 in 1 : vector<4x241xf32>, vector<4x15xf32> -> vector<4x256xf32>
    %cst_22 = arith.constant 0.000000e+00 : f32
    %124 = vector.shape_cast %25 : vector<1x256xi1> to vector<1x256xi1>
    %125 = vector.broadcast %124 : vector<1x256xi1> to vector<4x256xi1>
    %126 = vector.broadcast %cst_22 : f32 to vector<4x256xf32>
    %127 = arith.select %125, %123, %126 : vector<4x256xi1>, vector<4x256xf32>
    %128 = vector.extract_strided_slice %89 {offsets = [0, 16], sizes = [4, 240], strides = [1, 1]} : vector<4x256xf32> to vector<4x240xf32>
    %129 = vector.extract_strided_slice %35 {offsets = [0, 0], sizes = [4, 16], strides = [1, 1]} : vector<4x256xf32> to vector<4x16xf32>
    %130 = tpu.concatenate %128, %129 in 1 : vector<4x240xf32>, vector<4x16xf32> -> vector<4x256xf32>
    %131 = vector.extract_strided_slice %89 {offsets = [0, 17], sizes = [4, 239], strides = [1, 1]} : vector<4x256xf32> to vector<4x239xf32>
    %132 = vector.extract_strided_slice %35 {offsets = [0, 0], sizes = [4, 17], strides = [1, 1]} : vector<4x256xf32> to vector<4x17xf32>
    %133 = tpu.concatenate %131, %132 in 1 : vector<4x239xf32>, vector<4x17xf32> -> vector<4x256xf32>
    %cst_23 = arith.constant 0.000000e+00 : f32
    %134 = vector.shape_cast %34 : vector<1x256xi1> to vector<1x256xi1>
    %135 = vector.broadcast %134 : vector<1x256xi1> to vector<4x256xi1>
    %136 = vector.broadcast %cst_23 : f32 to vector<4x256xf32>
    %137 = arith.select %135, %133, %136 : vector<4x256xi1>, vector<4x256xf32>
    %138 = tpu.concatenate %96, %99, %106, %113, %89, %120, %127, %130, %137 in 0 : vector<4x256xf32>, vector<4x256xf32>, vector<4x256xf32>, vector<4x256xf32>, vector<4x256xf32>, vector<4x256xf32>, vector<4x256xf32>, vector<4x256xf32>, vector<4x256xf32> -> vector<36x256xf32>
    %139 = tpu.concatenate %87, %138 in 1 : vector<36x256xf32>, vector<36x256xf32> -> vector<36x512xf32>
    %140 = arith.truncf %139 : vector<36x512xf32> to vector<36x512xbf16>
    %c0_24 = arith.constant 0 : index
    %c0_25 = arith.constant 0 : index
    %141 = vector.load %arg2[%c0_24, %c0_25] : memref<8x36xbf16, #tpu.memory_space<vmem>>, vector<8x36xbf16>
    %cst_26 = arith.constant dense<0.000000e+00> : vector<8x512xf32>
    %142 = tpu.matmul %141, %140, %cst_26 {dimension_numbers = #tpu.dot_dimension_numbers<[1], [0], [0], [1], [0, 0, 1, 1], [], []>} : vector<8x36xbf16>, vector<36x512xbf16>, vector<8x512xf32> -> vector<8x512xf32>
    %c0_27 = arith.constant 0 : index
    %c0_28 = arith.constant 0 : index
    %143 = vector.load %arg3[%c0_27, %c0_28] : memref<8x1xf32, #tpu.memory_space<vmem>>, vector<8x1xf32>
    %144 = vector.broadcast %143 : vector<8x1xf32> to vector<8x512xf32>
    %145 = arith.addf %142, %144 : vector<8x512xf32>
    %cst_29 = arith.constant 0.000000e+00 : f32
    %146 = vector.broadcast %cst_29 : f32 to vector<8x512xf32>
    %147 = arith.maximumf %145, %146 : vector<8x512xf32>
    %148 = vector.extract_strided_slice %147 {offsets = [0, 0], sizes = [8, 256], strides = [1, 1]} : vector<8x512xf32> to vector<8x256xf32>
    %c0_30 = arith.constant 0 : index
    %c0_31 = arith.constant 0 : index
    %c0_32 = arith.constant 0 : index
    %149 = vector.load %arg4[%c0_30, %c0_31, %c0_32] : memref<2x8x256xf32, #tpu.memory_space<vmem>>, vector<1x8x256xf32>
    %150 = vector.shape_cast %149 : vector<1x8x256xf32> to vector<8x256xf32>
    %151 = vector.shape_cast %148 : vector<8x256xf32> to vector<1x8x256xf32>
    tpu.vector_store %arg4[%c0_30, %c0_31, %c0_32], %151 {strides = array<i32>} : memref<2x8x256xf32, #tpu.memory_space<vmem>>, vector<1x8x256xf32>,
    %152 = vector.extract_strided_slice %147 {offsets = [0, 256], sizes = [8, 256], strides = [1, 1]} : vector<8x512xf32> to vector<8x256xf32>
    %c1 = arith.constant 1 : index
    %c0_33 = arith.constant 0 : index
    %c0_34 = arith.constant 0 : index
    %153 = vector.load %arg4[%c1, %c0_33, %c0_34] : memref<2x8x256xf32, #tpu.memory_space<vmem>>, vector<1x8x256xf32>
    %154 = vector.shape_cast %153 : vector<1x8x256xf32> to vector<8x256xf32>
    %155 = vector.shape_cast %152 : vector<8x256xf32> to vector<1x8x256xf32>
    tpu.vector_store %arg4[%c1, %c0_33, %c0_34], %155 {strides = array<i32>} : memref<2x8x256xf32, #tpu.memory_space<vmem>>, vector<1x8x256xf32>,
    return
  }
  func.func @transform_0(%arg0: i32) -> (i32, i32, i32) {
    %c0_i32 = arith.constant 0 : i32
    %c0_i32_0 = arith.constant 0 : i32
    %c0_i32_1 = arith.constant 0 : i32
    return %arg0, %c0_i32, %c0_i32_0 : i32, i32, i32
  }
  func.func @transform_1(%arg0: i32) -> (i32, i32) {
    %c0_i32 = arith.constant 0 : i32
    %c0_i32_0 = arith.constant 0 : i32
    %c0_i32_1 = arith.constant 0 : i32
    return %c0_i32, %c0_i32_0 : i32, i32
  }
  func.func @transform_2(%arg0: i32) -> (i32, i32) {
    %c0_i32 = arith.constant 0 : i32
    %c0_i32_0 = arith.constant 0 : i32
    %c0_i32_1 = arith.constant 0 : i32
    return %c0_i32, %c0_i32_0 : i32, i32
  }
  func.func @transform_3(%arg0: i32) -> (i32, i32, i32) {
    %c0_i32 = arith.constant 0 : i32
    %c0_i32_0 = arith.constant 0 : i32
    %c0_i32_1 = arith.constant 0 : i32
    return %arg0, %c0_i32, %c0_i32_0 : i32, i32, i32
  }
}

</mosaic_0001>

<bundles_post_ra>
// kernel: tpu_custom_call.1
= control target key start
LH: loop header
LB: loop body
LE: loop exit
PB: predicated region body
PF: predicated region fallthrough
CT: control target
= control target key end

     0   :  { %8 = vsyncpa [#allocation3], 0  ;;  %s806_s0 = inlined_call_operand.hbm [shape: f32[2,4,256], index: 0, kind: input, shape index: {}]   ;;  %s807_s1 = inlined_call_operand.vmem [shape: bf16[8,36], index: 1, kind: input, shape index: {}]   ;;  %s808_s2 = inlined_call_operand.vmem [shape: f32[8,1], index: 2, kind: input, shape index: {}]   ;;  %s809_s3 = inlined_call_operand.hbm [shape: f32[2,8,256], index: 3, kind: output, shape index: {}]  }
   0x1   :  { %9 = vsyncpa [#allocation4], 0  ;;  %s595_s12 = smov [#allocation2]  }
   0x2   :  { %s15_s13 = sshll.u32 %s595_s12, 4  ;;  %s16_s13 = int_to_ptr.vmem [resolvable:$true] %s15_s13 }
   0x3   :  { %s559_s14 = scalar_lea.vmem %s16_s13, 256  ;;  %p564_p1 = scmp.lt.s32.totalorder %s16_s13, %s16_s13 }
   0x4   :  { %p560_p0 = scmp.ne.s32.totalorder %s16_s13, %s559_s14  ;;  %p565_p2 = scmp.lt.s32.totalorder %s559_s14, %s559_s14 }
   0x6   :  { %p566_p3 = por %p565_p2, %p564_p1 }
   0x8   :  { %p567_p4 = pnand %p566_p3, %p560_p0 }
   0xa   :  { %570 = shalt.err (!%p567_p4)
}
   0xb   :  { %s596_s15 = smov 128   ;;  %s597_s16 = smov 8  }
   0xc   :  { %21 = dma.hbm_to_vmem [thread:$0]  %s806_s0, 256, %s16_s13, [#allocation3], %s596_s15, %s596_s15, %s597_s16  }
   0xd   :  { %591 = dma.done.wait [#allocation3], 256  }
   0xe   :  { %592 = vsyncadd [#allocation3], 4294967040  ;;  %v632_v0 = vld [vmem:[#allocation2] sm:$0xff]  ;;  %v634_v1 = vld [vmem:[#allocation2 + $0x8] sm:$0xff]  ;;  %s598_s19 = smov 127   ;;  %s599_s0 = smov 111   ;;  %v30_v10 = vlaneseq }
   0xf   :  { %v468_v2 = vpack.i.bf16 %v634_v1, %v632_v0  ;;  %v640_v3 = vcombine.high %v632_v0, %v632_v0  ;;  %v644_v4 = vcombine.high %v634_v1, %v634_v1  ;;  %s600_s20 = smov 113   ;;  %s601_s21 = smov 112   ;;  %v605_v8 = vmov 0   ;;  %v319_v9 = vld [vmem:[%s808_s2] sm:$0xff] }
  0x10   :  { %s602_s22 = smov 1   ;;  %s603_s23 = smov 16   ;;  %374 = vmatprep.mubr.bf16.mxu0 %v605_v8  ;;  %415 = vmatprep.mubr.bf16.mxu1 %v605_v8  ;;  %v31_v11 = vand.u32 127, %v30_v10  ;;  %vm130_vm0 = vcmask 1039360   ;;  %vm141_vm1 = vcmask 924672   ;;  %vm160_vm2 = vcmask 908288  }
  0x11   :  { %469 = vrot.lane.b32.xlu1 %v468_v2, %s598_s19  ;;  %v473_v5 = vpack.i.bf16 %v640_v3, %v632_v0  ;;  %v483_v6 = vpack.i.bf16 %v644_v4, %v640_v3  ;;  %v478_v7 = vpack.i.bf16 %v644_v4, %v634_v1  ;;  %s604_s24 = smov 15   ;;  %s606_s25 = smov 17   ;;  %548 = vset.pattern.permute.xlu0 %v605_v8  ;;  %vm329_vm6 = vcmask 1041408  }
  0x12   :  { %v32_v12 = vadd.s32 128, %v31_v11  ;;  %v37_v13 = vand.u32 15, %v31_v11  ;;  %vm152_vm7 = vcmask 916480   ;;  %vm190_vm8 = vcmask 1043456  }
  0x13   :  { %474 = vrot.lane.b32.xlu0 %v473_v5, %s599_s0  ;;  %vm119_vm9 = vcmask 7168   ;;  %vm96_vm11 = vcmask 130048   ;;  %vm104_vm12 = vcmask 121856   ;;  %vm81_vm13 = vcmask 138240  }
  0x14   :  { %v44_v14 = vand.u32 15, %v32_v12  ;;  %v657_v15 = vadd.s32 1, %v37_v13  ;;  %v672_v32 = vadd.s32 4294967295, %v37_v13  ;;  %vm325_vm14 = vcmask 293888  }
  0x15   :  { %484 = vrot.lane.b32.xlu1 %v483_v6, %s598_s19 }
  0x16   :  { %v659_v16 = vadd.s32 1, %v44_v14  ;;  %v661_v18 = vadd.s32 4294967295, %v44_v14  ;;  %vm69_vm3 = vcmp.lt.s32.totalorder %v657_v15, 16  ;;  %vm59_vm10 = vcmp.ge.s32.totalorder %v672_v32, 0 }
  0x17   :  { %479 = vrot.lane.b32.xlu0 %v478_v7, %s599_s0 }
  0x18   :  { %vm70_vm4 = vcmp.lt.s32.totalorder %v659_v16, 16  ;;  %vm60_vm5 = vcmp.ge.s32.totalorder %v661_v18, 0 }
  0x19   :  { %499 = vrot.lane.b32.xlu1 %v483_v6, %s600_s20 }
  0x1b   :  { %489 = vrot.lane.b32.xlu0 %v483_v6, %s601_s21 }
  0x1d   :  { %504 = vrot.lane.b32.xlu1 %v468_v2, %s600_s20 }
  0x1f   :  { %494 = vrot.lane.b32.xlu0 %v468_v2, %s601_s21 }
  0x21   :  { %514 = vrot.lane.b32.xlu1 %v478_v7, %s602_s22 }
  0x23   :  { %509 = vrot.lane.b32.xlu0 %v473_v5, %s602_s22 }
  0x25   :  { %524 = vrot.lane.b32.xlu1 %v478_v7, %s603_s23 }
  0x27   :  { %519 = vrot.lane.b32.xlu0 %v473_v5, %s603_s23 }
  0x29   :  { %534 = vrot.lane.b32.xlu1 %v473_v5, %s604_s24 }
  0x2b   :  { %529 = vrot.lane.b32.xlu0 %v473_v5, %s606_s25 }
  0x2d   :  { %544 = vrot.lane.b32.xlu1 %v478_v7, %s604_s24 }
  0x2f   :  { %539 = vrot.lane.b32.xlu0 %v478_v7, %s606_s25 }
  0x33   :  { %322 = vperm.xlu0 %548, %v319_v9  }
  0x83   :  { %v470_v17 = vpop.permute.xlu1 %469 }
  0x84   :  { %v472_v22 = vunpack.i.h.bf16 %v470_v17  ;;  %v471_v23 = vunpack.i.l.bf16 %v470_v17 }
  0x85   :  { %v475_v19 = vpop.permute.xlu0 %474 }
  0x86   :  { %v477_v20 = vunpack.i.h.bf16 %v475_v19  ;;  %v476_v21 = vunpack.i.l.bf16 %v475_v19 }
  0x87   :  { %v485_v24 = vpop.permute.xlu1 %484 }
  0x88   :  { %v487_v25 = vunpack.i.h.bf16 %v485_v24  ;;  %v486_v26 = vunpack.i.l.bf16 %v485_v24  ;;  %v164_v27 = vsel %vm160_vm2, %v477_v20, 0.0  ;;  %v161_v28 = vsel %vm160_vm2, %v476_v21, %v477_v20 }
  0x89   :  { %v480_v29 = vpop.permute.xlu0 %479  ;;  %v166_v30 = vsel %vm70_vm4, %v164_v27, 0.0  ;;  %v165_v31 = vsel %vm69_vm3, %v161_v28, 0.0 }
  0x8a   :  { %v242_v33 = vsel %vm130_vm0, %v472_v22, %v487_v25  ;;  %v245_v34 = vsel %vm130_vm0, %v487_v25, 0.0  ;;  %v131_v35 = vsel %vm130_vm0, %v471_v23, %v486_v26  ;;  %v134_v36 = vsel %vm130_vm0, %v486_v26, 0.0 }
  0x8b   :  { %v680_v37 = vsel %vm69_vm3, %v242_v33, 0.0  ;;  %v684_v38 = vsel %vm70_vm4, %v245_v34, 0.0  ;;  %v688_v39 = vsel %vm69_vm3, %v131_v35, 0.0  ;;  %v136_v40 = vsel %vm70_vm4, %v134_v36, 0.0  ;;  %v500_v41 = vpop.permute.xlu1 %499 }
  0x8c   :  { %v289_v42 = vrot.slane %v680_v37, 4  ;;  %v290_v43 = vrot.slane %v684_v38, 4  ;;  %v181_v44 = vrot.slane %v688_v39, 4  ;;  %v182_v45 = vrot.slane %v136_v40, 4 }
  0x8d   :  { %v482_v46 = vunpack.i.h.bf16 %v480_v29  ;;  %v481_v47 = vunpack.i.l.bf16 %v480_v29  ;;  %v502_v48 = vunpack.i.h.bf16 %v500_v41  ;;  %v501_v49 = vunpack.i.l.bf16 %v500_v41  ;;  %v490_v50 = vpop.permute.xlu0 %489 }
  0x8e   :  { %v315_v51 = vpack.c.bf16 %v166_v30, %v166_v30  ;;  %v492_v52 = vunpack.i.h.bf16 %v490_v50  ;;  %v491_v53 = vunpack.i.l.bf16 %v490_v50  ;;  %v314_v54 = vpack.c.bf16 %v165_v31, %v165_v31 }
  0x8f   :  { %v255_v55 = vsel %vm141_vm1, %v502_v48, 0.0  ;;  %v145_v56 = vsel %vm141_vm1, %v501_v49, 0.0  ;;  %v505_v57 = vpop.permute.xlu1 %504  ;;  %v272_v58 = vsel %vm160_vm2, %v482_v46, 0.0  ;;  %v269_v59 = vsel %vm160_vm2, %v481_v47, %v482_v46 }
  0x90   :  { %v257_v60 = vsel %vm60_vm5, %v255_v55, 0.0  ;;  %v147_v61 = vsel %vm60_vm5, %v145_v56, 0.0  ;;  %450 = vmatprep.subr.msk.bf16.mxu0 %vm329_vm6, %v315_v51  ;;  %v264_v62 = vsel %vm152_vm7, %v492_v52, 0.0  ;;  %v155_v63 = vsel %vm152_vm7, %v491_v53, 0.0 }
  0x91   :  { %v295_v2 = vrot.slane %v264_v62, 4  ;;  %v187_v5 = vrot.slane %v155_v63, 4  ;;  %v331_v6 = vsel %vm329_vm6, %v314_v54, 0  ;;  %v507_v7 = vunpack.i.h.bf16 %v505_v57  ;;  %v495_v8 = vpop.permute.xlu0 %494 }
  0x92   :  { %353 = vmatpush1.bf16.msra.mxu0 %v331_v6  ;;  %v506_v9 = vunpack.i.l.bf16 %v505_v57  ;;  %v274_v10 = vsel %vm70_vm4, %v272_v58, 0.0  ;;  %v497_v11 = vunpack.i.h.bf16 %v495_v8  ;;  %v496_v12 = vunpack.i.l.bf16 %v495_v8 }
  0x93   :  { %v252_v13 = vsel %vm141_vm1, %v507_v7, %v502_v48  ;;  %v317_v14 = vpack.c.bf16 %v274_v10, %v274_v10  ;;  %v273_v17 = vsel %vm69_vm3, %v269_v59, 0.0  ;;  %v515_v19 = vpop.permute.xlu1 %514  ;;  %v196_v20 = vsel %vm190_vm8, %v640_v3, %v182_v45 }
  0x94   :  { %v142_v21 = vsel %vm141_vm1, %v506_v9, %v501_v49  ;;  %v153_v22 = vsel %vm152_vm7, %v496_v12, %v491_v53  ;;  %v262_v23 = vsel %vm152_vm7, %v497_v11, %v492_v52  ;;  %v316_v24 = vpack.c.bf16 %v273_v17, %v273_v17 }
  0x95   :  { %452 = vmatprep.subr.msk.bf16.mxu1 %vm329_vm6, %v317_v14  ;;  %v186_v25 = vrot.slane %v153_v22, 4  ;;  %v294_v26 = vrot.slane %v262_v23, 4  ;;  %v517_v27 = vunpack.i.h.bf16 %v515_v19  ;;  %v516_v28 = vunpack.i.l.bf16 %v515_v19  ;;  %v510_v29 = vpop.permute.xlu0 %509 }
  0x96   :  { %v337_v30 = vsel %vm329_vm6, %v316_v24, 0  ;;  %v512_v31 = vunpack.i.h.bf16 %v510_v29  ;;  %v511_v33 = vunpack.i.l.bf16 %v510_v29  ;;  %v198_v3 = vsel %vm190_vm8, %v147_v61, %v187_v5 }
  0x97   :  { %394 = vmatpush1.bf16.msra.mxu1 %v337_v30  ;;  %v232_v34 = vsel %vm119_vm9, %v516_v28, %v517_v27  ;;  %v235_v35 = vsel %vm119_vm9, 0.0, %v516_v28  ;;  %v311_v36 = vpack.c.bf16 %v198_v3, %v196_v20  ;;  %v303_v38 = vsel %vm190_vm8, %v644_v4, %v290_v43  ;;  %v525_v40 = vpop.permute.xlu1 %524 }
  0x98   :  { %v727_v41 = vsel %vm59_vm10, %v235_v35, 0.0  ;;  %v731_v45 = vsel %vm60_vm5, %v232_v34, 0.0  ;;  %v120_v46 = vsel %vm119_vm9, %v511_v33, %v512_v31  ;;  %v123_v47 = vsel %vm119_vm9, 0.0, %v511_v33 }
  0x99   :  { %v282_v48 = vrot.slane %v727_v41, 4  ;;  %v283_v49 = vrot.slane %v731_v45, 4  ;;  %v739_v4 = vsel %vm59_vm10, %v123_v47, 0.0  ;;  %v125_v43 = vsel %vm60_vm5, %v120_v46, 0.0  ;;  %354 = vmatprep.subr.bf16.mxu0 %v311_v36  ;;  %v520_v50 = vpop.permute.xlu0 %519 }
  0x9a   :  { %v174_v51 = vrot.slane %v739_v4, 4  ;;  %v175_v52 = vrot.slane %v125_v43, 4  ;;  %v305_v53 = vsel %vm190_vm8, %v257_v60, %v295_v2  ;;  %v527_v54 = vunpack.i.h.bf16 %v525_v40 }
  0x9b   :  { %v313_v55 = vpack.c.bf16 %v305_v53, %v303_v38  ;;  %v526_v56 = vunpack.i.l.bf16 %v525_v40  ;;  %v522_v57 = vunpack.i.h.bf16 %v520_v50  ;;  %v521_v58 = vunpack.i.l.bf16 %v520_v50  ;;  %v535_v59 = vpop.permute.xlu1 %534 }
  0x9c   :  { %v146_v61 = vsel %vm59_vm10, %v142_v21, 0.0  ;;  %v195_v62 = vsel %vm190_vm8, %v632_v0, %v181_v44  ;;  %v256_v63 = vsel %vm59_vm10, %v252_v13, 0.0  ;;  %v302_v60 = vsel %vm190_vm8, %v634_v1, %v289_v42 }
  0x9d   :  { %395 = vmatprep.subr.bf16.mxu1 %v313_v55  ;;  %v215_v2 = vsel %vm96_vm11, %v526_v56, %v527_v54  ;;  %v217_v5 = vsel %vm96_vm11, 0.0, %v526_v56  ;;  %v97_v6 = vsel %vm96_vm11, %v521_v58, %v522_v57  ;;  %v99_v39 = vsel %vm96_vm11, 0.0, %v521_v58  ;;  %v530_v7 = vpop.permute.xlu0 %529 }
  0x9e   :  { %v276_v8 = vrot.slane %v217_v5, 4  ;;  %v277_v0 = vrot.slane %v215_v2, 4  ;;  %v168_v44 = vrot.slane %v99_v39, 4  ;;  %v169_v9 = vrot.slane %v97_v6, 4 }
  0x9f   :  { %v197_v10 = vsel %vm190_vm8, %v146_v61, %v186_v25  ;;  %v304_v37 = vsel %vm190_vm8, %v256_v63, %v294_v26  ;;  %v537_v11 = vunpack.i.h.bf16 %v535_v59  ;;  %v536_v1 = vunpack.i.l.bf16 %v535_v59  ;;  %v545_v42 = vpop.permute.xlu1 %544 }
  0xa0   :  { %v310_v12 = vpack.c.bf16 %v197_v10, %v195_v62  ;;  %v312_v13 = vpack.c.bf16 %v304_v37, %v302_v60  ;;  %v532_v14 = vunpack.i.h.bf16 %v530_v7  ;;  %v531_v17 = vunpack.i.l.bf16 %v530_v7 }
  0xa1   :  { %v105_v19 = vsel %vm104_vm12, %v536_v1, %v537_v11  ;;  %v108_v20 = vsel %vm104_vm12, 0.0, %v536_v1  ;;  %v547_v21 = vunpack.i.h.bf16 %v545_v42  ;;  %v546_v22 = vunpack.i.l.bf16 %v545_v42  ;;  %v540_v23 = vpop.permute.xlu0 %539 }
  0xa2   :  { %355 = vmatpush1.bf16.msra.mxu0 %v310_v12  ;;  %396 = vmatpush1.bf16.msra.mxu1 %v312_v13  ;;  %v113_v24 = vsel %vm69_vm3, %v108_v20, 0.0  ;;  %v82_v25 = vsel %vm81_vm13, %v531_v17, %v532_v14  ;;  %v85_v26 = vsel %vm81_vm13, 0.0, %v531_v17  ;;  %v542_v27 = vunpack.i.h.bf16 %v540_v23 }
  0xa3   :  { %v90_v28 = vsel %vm59_vm10, %v85_v26, 0.0  ;;  %v222_v29 = vsel %vm104_vm12, %v546_v22, %v547_v21  ;;  %v225_v30 = vsel %vm104_vm12, 0.0, %v546_v22  ;;  %v541_v31 = vunpack.i.l.bf16 %v540_v23 }
  0xa4   :  { %v226_v33 = vsel %vm69_vm3, %v225_v30, 0.0  ;;  %v227_v3 = vsel %vm70_vm4, %v222_v29, 0.0  ;;  %v91_v34 = vsel %vm60_vm5, %v82_v25, 0.0  ;;  %v114_v35 = vsel %vm70_vm4, %v105_v19, 0.0 }
  0xa5   :  { %v205_v36 = vsel %vm81_vm13, %v541_v31, %v542_v27  ;;  %v208_v38 = vsel %vm81_vm13, 0.0, %v541_v31  ;;  %v192_v40 = vsel %vm190_vm8, %v91_v34, %v169_v9  ;;  %v194_v46 = vsel %vm190_vm8, %v114_v35, %v175_v52 }
  0xa6   :  { %v209_v15 = vsel %vm59_vm10, %v208_v38, 0.0  ;;  %v307_v47 = vpack.c.bf16 %v194_v46, %v192_v40  ;;  %v191_v4 = vsel %vm190_vm8, %v90_v28, %v168_v44  ;;  %v193_v43 = vsel %vm190_vm8, %v113_v24, %v174_v51  ;;  %v318_v51 = vld [vmem:[%s807_s1] sm:$0xf]  ;;  %s607_s1 = smov [#allocation5]  }
  0xa7   :  { %v306_v50 = vpack.c.bf16 %v193_v43, %v191_v4  ;;  %v210_v16 = vsel %vm60_vm5, %v205_v36, 0.0  ;;  %v298_v53 = vsel %vm190_vm8, %v209_v15, %v276_v8  ;;  %v301_v52 = vsel %vm190_vm8, %v227_v3, %v283_v49  ;;  %s438_s29 = sshll.u32 %s607_s1, 4  ;;  %s439_s29 = int_to_ptr.vmem [resolvable:$true] %s438_s29 }
  0xa8   :  { %356 = vmatprep.subr.bf16.mxu0 %v307_v47  ;;  %v299_v54 = vsel %vm190_vm8, %v210_v16, %v277_v0  ;;  %v300_v32 = vsel %vm190_vm8, %v226_v33, %v282_v48  ;;  %s571_s30 = scalar_lea.vmem %s439_s29, 512  ;;  %p576_p6 = scmp.lt.s32.totalorder %s439_s29, %s439_s29 }
  0xa9   :  { %357 = vmatpush1.bf16.msra.mxu0 %v306_v50  ;;  %v309_v18 = vpack.c.bf16 %v301_v52, %v299_v54  ;;  %v308_v55 = vpack.c.bf16 %v300_v32, %v298_v53  ;;  %p572_p5 = scmp.ne.s32.totalorder %s439_s29, %s571_s30  ;;  %p577_p7 = scmp.lt.s32.totalorder %s571_s30, %s571_s30 }
  0xab   :  { %397 = vmatprep.subr.bf16.mxu1 %v309_v18  ;;  %p578_p8 = por %p577_p7, %p576_p6 }
  0xac   :  { %451 = vmatmul.mubr.msk.bf16.vlgmr.msra.gmra.mxu0 %vm325_vm14, %v318_v51  ;;  %398 = vmatpush1.bf16.msra.mxu1 %v308_v55 }
  0xad   :  { %p579_p9 = pnand %p578_p8, %p572_p5 }
  0xae   :  { %v323_v56 = vpop.permute.xlu0 %322 }
  0xaf   :  { %453 = vmatmul.mubr.msk.bf16.vlgmr.msra.gmra.mxu1 %vm325_vm14, %v318_v51 }
 0x16c   :  { %v376_v45 = vpop.f32.mrf.mxu0 }
 0x16d   :  { %v377_v57 = vadd.f32 %v376_v45, %v323_v56 }
 0x16e   :  { %v378_v49 = vpop.f32.mrf.mxu0 }
 0x16f   :  { %v379_v58 = vadd.f32 %v378_v49, %v323_v56  ;;  %v424_v41 = vmax.f32 %v377_v57, 0.0  ;;  %v417_v59 = vpop.f32.mrf.mxu1 }
 0x170   :  { %v380_v48 = vpop.f32.mrf.mxu0  ;;  %v418_v61 = vadd.f32 %v417_v59, %v323_v56 }
 0x171   :  { %v425_v62 = vmax.f32 %v379_v58, 0.0  ;;  %428 = vst [vmem:[#allocation5] sm:$0xff] %v424_v41  ;;  %v419_v63 = vpop.f32.mrf.mxu1 }
 0x172   :  { %v426_v60 = vmax.f32 %v418_v61, 0.0  ;;  %v381_v2 = vpop.f32.mrf.mxu0  ;;  %v420_v5 = vadd.f32 %v419_v63, %v323_v56 }
 0x173   :  { %429 = vst [vmem:[#allocation5 + $0x8] sm:$0xff] %v425_v62  ;;  %v421_v6 = vpop.f32.mrf.mxu1 }
 0x174   :  { %431 = vst [vmem:[#allocation5 + $0x10] sm:$0xff] %v426_v60  ;;  %v427_v39 = vmax.f32 %v420_v5, 0.0 }
 0x175   :  { %v422_v7 = vpop.f32.mrf.mxu1 }
 0x176   :  { %432 = vst [vmem:[#allocation5 + $0x18] sm:$0xff] %v427_v39 }
 0x177   :  { %582 = shalt.err (!%p579_p9)
}
 0x178   :  { %s608_s4 = smov 256  }
 0x179   :  { %444 = dma.vmem_to_hbm [thread:$0]  %s439_s29, 512, %s809_s3, [#allocation4], %s608_s4, %s608_s4, %s603_s23  }
 0x17a   :  { %593 = dma.done.wait [#allocation4], 512  }
 0x17b   :  { %594 = vsyncadd [#allocation4], 4294966784 }
 0x17c   :  { %448 = vsyncpa [#allocation3], 1 }
 0x17d   :  { %449 = vsyncpa [#allocation4], 1 }

</bundles_post_ra>
